<compile_context>
chip_gen: v5e
topology: v5e:2x2
jax: 0.10.0
libtpu: 0.0.40
codegen_flags: <defaults>
</compile_context>

<pallas_src>
import functools

import jax
import jax.numpy as jnp
from jax import lax
from jax.experimental import pallas as pl
from jax.experimental.pallas import tpu as pltpu


# ---- model hyperparameters (mirror NeuralNet.__init__) ----
INPUT_DIM = 4
OUTPUT_DIM = 4
N_HIDDEN_LAYERS = 3          # -> input_layer + (N_HIDDEN_LAYERS - 1) hidden + output_layer
NEURONS = 32
ACT_KIND = "tanh"            # "tanh" (Steep/TrainableTanh, nn.Tanh) or "relu" (Steep/TrainableReLU)
INIT_COEFF = 1.5
TB_MAX = 8192                # batch tile (lanes); multiple of 128, VMEM-trivial on v5e/v6e/v7x


def _round_up(n, m):
    return ((n + m - 1) // m) * m


def _default_compute_dtype():
    """bf16 activations/matmul operands on bf16-native EUP/VPU chips (v6e/v7x);
    f32 elementwise on v5e and older / unknown devices (no bf16 EUP there)."""
    try:
        kind = jax.devices()[0].device_kind.lower()
    except Exception:
        return jnp.float32
    if ("v6" in kind) or ("v7" in kind):
        return jnp.bfloat16
    return jnp.float32


def _activation(pre_f32, coeff, act_kind, compute_dtype):
    """activation(coeff * (Wx + b)); computed in compute_dtype (bf16 on v6e/v7x)."""
    z = (coeff * pre_f32).astype(compute_dtype)
    if act_kind == "relu":
        return jnp.maximum(z, 0.0)
    return jnp.tanh(z)


def mlp_kernel(coeff_ref, x_ref, w_in_ref, b_in_ref, w_h_ref, b_h_ref,
               w_out_ref, b_out_ref, o_ref, *, n_hidden_layers, act_kind,
               compute_dtype):
    """Lane-dense MLP tile.

    x_ref:  [TB, in_dim]  (natural layout, contiguous DMA)
    hidden: [neurons, TB] (batch on the 128-lane axis -> full vregs for EUP tanh)
    o_ref:  [TB, out_dim] (already PyTorch-oriented; no wrapper transpose)
    coeff_ref: SMEM (n_hidden_layers,) -- one coeff per activation (Trainable*),
               or the same value repeated (Steep*/default Tanh).
    """
    xb = x_ref[...].astype(compute_dtype)

    # input_layer: contract in_dim -> [neurons, TB]
    h = lax.dot_general(w_in_ref[...], xb,
                        dimension_numbers=(((1,), (1,)), ((), ())),
                        preferred_element_type=jnp.float32)
    h = _activation(h + b_in_ref[...], coeff_ref[0], act_kind, compute_dtype)

    # hidden_layers: (n_hidden_layers - 1) x [neurons, neurons] @ [neurons, TB]
    for j in range(n_hidden_layers - 1):
        h = jnp.dot(w_h_ref[j], h, preferred_element_type=jnp.float32)
        h = _activation(h + b_h_ref[j], coeff_ref[j + 1], act_kind, compute_dtype)

    # output_layer (no activation): contract neurons, result directly [TB, out_dim]
    out = lax.dot_general(h, w_out_ref[...],
                          dimension_numbers=(((0,), (1,)), ((), ())),
                          preferred_element_type=jnp.float32)
    o_ref[...] = (out + b_out_ref[...]).astype(o_ref.dtype)


def neural_net_forward(x, params, coeffs, *, act_kind=ACT_KIND,
                       n_hidden_layers=N_HIDDEN_LAYERS, tb_max=TB_MAX,
                       compute_dtype=None):
    """Pallas forward pass of NeuralNet.

    x:      [batch, input_dim] float32
    params: torch-layout weights:
            w_in  [neurons, input_dim], b_in  [neurons, 1]
            w_h   [n_hid, neurons, neurons], b_h [n_hid, neurons, 1]
            w_out [out_dim, neurons], b_out [out_dim, 1]
    coeffs: [n_hidden_layers] activation coefficients (runtime, no recompile).
    Returns [batch, output_dim] float32 (same orientation as the PyTorch module).
    """
    if compute_dtype is None:
        compute_dtype = _default_compute_dtype()

    w_in, b_in, w_h, b_h, w_out, b_out = params
    batch, in_dim = x.shape
    neurons = w_in.shape[0]
    out_dim = w_out.shape[0]
    n_hid = n_hidden_layers - 1

    # Batch tile: multiple of 8 sublanes, large (amortizes ~0.35us/step overhead),
    # but capped so the grid keeps >=2 steps (v7x megacore) and never far exceeds
    # the batch itself. No host-side padding: grid = cdiv(batch, tb).
    tb = min(tb_max,
             max(128, _round_up(pl.cdiv(batch, 2), 128)),
             _round_up(batch, 8))
    grid = (pl.cdiv(batch, tb),)

    # Cast weights once (bf16 on v6e/v7x); biases stay f32 (added to f32 accum).
    w_in_c = w_in.astype(compute_dtype)
    w_h_c = w_h.astype(compute_dtype)
    w_out_c = w_out.astype(compute_dtype)
    b_out_row = b_out.reshape(1, out_dim).astype(jnp.float32)
    coeffs = jnp.asarray(coeffs, jnp.float32).reshape(n_hidden_layers)

    kernel = functools.partial(mlp_kernel, n_hidden_layers=n_hidden_layers,
                               act_kind=act_kind, compute_dtype=compute_dtype)

    flops = 2 * batch * (in_dim * neurons + n_hid * neurons * neurons
                         + neurons * out_dim)
    transcendentals = batch * n_hidden_layers * neurons if act_kind == "tanh" else 0
    bytes_accessed = 4 * batch * (in_dim + out_dim) + 4 * (
        w_in.size + b_in.size + w_h.size + b_h.size + w_out.size + b_out.size)

    out = pl.pallas_call(
        kernel,
        out_shape=jax.ShapeDtypeStruct((batch, out_dim), jnp.float32),
        grid_spec=pltpu.PrefetchScalarGridSpec(
            num_scalar_prefetch=1,          # coeffs -> SMEM
            grid=grid,
            in_specs=[
                # streamed per batch tile (natural layout, contiguous DMA)
                pl.BlockSpec((tb, in_dim), lambda i, c: (i, 0)),
                # weights/biases: constant index_map -> VMEM-resident, no re-DMA
                pl.BlockSpec((neurons, in_dim), lambda i, c: (0, 0)),
                pl.BlockSpec((neurons, 1), lambda i, c: (0, 0)),
                pl.BlockSpec((n_hid, neurons, neurons), lambda i, c: (0, 0, 0)),
                pl.BlockSpec((n_hid, neurons, 1), lambda i, c: (0, 0, 0)),
                pl.BlockSpec((out_dim, neurons), lambda i, c: (0, 0)),
                pl.BlockSpec((1, out_dim), lambda i, c: (0, 0)),
            ],
            out_specs=pl.BlockSpec((tb, out_dim), lambda i, c: (i, 0)),
        ),
        compiler_params=pltpu.CompilerParams(
            dimension_semantics=("parallel",)),   # megacore sharding on v7x
        cost_estimate=pl.CostEstimate(flops=flops,
                                      transcendentals=transcendentals,
                                      bytes_accessed=bytes_accessed),
    )(coeffs, x, w_in_c, b_in, w_h_c, b_h, w_out_c, b_out_row)

    return out


def init_params(key):
    """Deterministic init mimicking torch.nn.Linear U(-1/sqrt(fan_in), 1/sqrt(fan_in)).
    Weights kept in torch layout [out_features, in_features]."""
    ks = jax.random.split(key, 6)

    def lin(kw, kb, fan_in, fan_out):
        bound = 1.0 / jnp.sqrt(fan_in)
        w = jax.random.uniform(kw, (fan_out, fan_in), jnp.float32, -bound, bound)
        b = jax.random.uniform(kb, (fan_out, 1), jnp.float32, -bound, bound)
        return w, b

    w_in, b_in = lin(ks[0], ks[1], INPUT_DIM, NEURONS)
    n_hid = N_HIDDEN_LAYERS - 1
    bound = 1.0 / jnp.sqrt(NEURONS)
    w_h = jax.random.uniform(ks[2], (n_hid, NEURONS, NEURONS), jnp.float32, -bound, bound)
    b_h = jax.random.uniform(ks[3], (n_hid, NEURONS, 1), jnp.float32, -bound, bound)
    w_out, b_out = lin(ks[4], ks[5], NEURONS, OUTPUT_DIM)
    return w_in, b_in, w_h, b_h, w_out, b_out


def reference_forward(x, params, coeffs, act_kind=ACT_KIND):
    """Pure-JAX f32 reference (mirrors the PyTorch forward: y = x @ W.T + b)."""
    w_in, b_in, w_h, b_h, w_out, b_out = params

    def act(z, c):
        return jnp.maximum(c * z, 0.0) if act_kind == "relu" else jnp.tanh(c * z)

    h = act(x @ w_in.T + b_in[:, 0], coeffs[0])
    for j in range(N_HIDDEN_LAYERS - 1):
        h = act(h @ w_h[j].T + b_h[j, :, 0], coeffs[j + 1])
    return h @ w_out.T + b_out[:, 0]


if __name__ == "__main__":
    key = jax.random.PRNGKey(0)
    k_x, k_p = jax.random.split(key)
    params = init_params(k_p)
    # one coeff per activation (covers Steep* with all-equal and Trainable* with distinct)
    coeffs = jnp.full((N_HIDDEN_LAYERS,), INIT_COEFF, jnp.float32)

    compute_dtype = _default_compute_dtype()
    tol = 3e-2 if compute_dtype == jnp.bfloat16 else 1e-4

    # batch=8: single exact tile; batch=300: 2 grid steps + partial boundary tile.
    for batch in (8, 300):
        x = jax.random.normal(jax.random.fold_in(k_x, batch),
                              (batch, INPUT_DIM), jnp.float32)
        out = jax.block_until_ready(
            neural_net_forward(x, params, coeffs, compute_dtype=compute_dtype))
        ref = reference_forward(x, params, coeffs)
        assert out.shape == (batch, OUTPUT_DIM)
        assert jnp.allclose(out, ref, atol=tol, rtol=tol), f"mismatch at batch={batch}"
    print("KERNEL_OK")
</pallas_src>

<mosaic_0001>
module attributes {stable_mosaic.version = 11 : i64} {
  func.func @mlp_kernel(%arg0: i32, %arg1: memref<3xf32, #tpu.memory_space<smem>>, %arg2: memref<8x4xf32, #tpu.memory_space<vmem>>, %arg3: memref<32x4xf32, #tpu.memory_space<vmem>>, %arg4: memref<32x1xf32, #tpu.memory_space<vmem>>, %arg5: memref<2x32x32xf32, #tpu.memory_space<vmem>>, %arg6: memref<2x32x1xf32, #tpu.memory_space<vmem>>, %arg7: memref<4x32xf32, #tpu.memory_space<vmem>>, %arg8: memref<1x4xf32, #tpu.memory_space<vmem>>, %arg9: memref<8x4xf32, #tpu.memory_space<vmem>>) attributes {dimension_semantics = [#tpu.dimension_semantics<parallel>], iteration_bounds = array<i64: 1>, scalar_prefetch = 1 : i64, scratch_operands = 0 : i64, tpu.core_type = #tpu.core_type<tc>, window_params = [{transform_indices = @transform_0, window_bounds = array<i64: 8, 4>}, {pipeline_mode = #tpu.pipeline_mode<synchronous>, transform_indices = @transform_1, window_bounds = array<i64: 32, 4>}, {pipeline_mode = #tpu.pipeline_mode<synchronous>, transform_indices = @transform_2, window_bounds = array<i64: 32, 1>}, {pipeline_mode = #tpu.pipeline_mode<synchronous>, transform_indices = @transform_3, window_bounds = array<i64: 2, 32, 32>}, {pipeline_mode = #tpu.pipeline_mode<synchronous>, transform_indices = @transform_4, window_bounds = array<i64: 2, 32, 1>}, {pipeline_mode = #tpu.pipeline_mode<synchronous>, transform_indices = @transform_5, window_bounds = array<i64: 4, 32>}, {pipeline_mode = #tpu.pipeline_mode<synchronous>, transform_indices = @transform_6, window_bounds = array<i64: 1, 4>}, {transform_indices = @transform_7, window_bounds = array<i64: 8, 4>}]} {
    %c0 = arith.constant 0 : index
    %c0_0 = arith.constant 0 : index
    %0 = vector.load %arg2[%c0, %c0_0] : memref<8x4xf32, #tpu.memory_space<vmem>>, vector<8x4xf32>
    %c0_1 = arith.constant 0 : index
    %c0_2 = arith.constant 0 : index
    %1 = vector.load %arg3[%c0_1, %c0_2] : memref<32x4xf32, #tpu.memory_space<vmem>>, vector<32x4xf32>
    %cst = arith.constant dense<0.000000e+00> : vector<32x8xf32>
    %2 = tpu.matmul %1, %0, %cst {dimension_numbers = #tpu.dot_dimension_numbers<[1], [1], [0], [0], [0, 0, 1, 0], [], []>} : vector<32x4xf32>, vector<8x4xf32>, vector<32x8xf32> -> vector<32x8xf32>
    %c0_3 = arith.constant 0 : index
    %c0_4 = arith.constant 0 : index
    %3 = vector.load %arg4[%c0_3, %c0_4] : memref<32x1xf32, #tpu.memory_space<vmem>>, vector<32x1xf32>
    %4 = vector.broadcast %3 : vector<32x1xf32> to vector<32x8xf32>
    %5 = arith.addf %2, %4 : vector<32x8xf32>
    %c0_5 = arith.constant 0 : index
    %6 = memref.load %arg1[%c0_5] : memref<3xf32, #tpu.memory_space<smem>>
    %7 = vector.broadcast %6 : f32 to vector<32x8xf32>
    %8 = arith.mulf %7, %5 : vector<32x8xf32>
    %9 = math.tanh %8 : vector<32x8xf32>
    %c0_6 = arith.constant 0 : index
    %c0_7 = arith.constant 0 : index
    %c0_8 = arith.constant 0 : index
    %10 = vector.load %arg5[%c0_6, %c0_7, %c0_8] : memref<2x32x32xf32, #tpu.memory_space<vmem>>, vector<1x32x32xf32>
    %11 = vector.shape_cast %10 : vector<1x32x32xf32> to vector<32x32xf32>
    %cst_9 = arith.constant dense<0.000000e+00> : vector<32x8xf32>
    %12 = tpu.matmul %11, %9, %cst_9 {dimension_numbers = #tpu.dot_dimension_numbers<[1], [0], [0], [1], [0, 0, 1, 1], [], []>} : vector<32x32xf32>, vector<32x8xf32>, vector<32x8xf32> -> vector<32x8xf32>
    %c0_10 = arith.constant 0 : index
    %c0_11 = arith.constant 0 : index
    %c0_12 = arith.constant 0 : index
    %13 = vector.load %arg6[%c0_10, %c0_11, %c0_12] : memref<2x32x1xf32, #tpu.memory_space<vmem>>, vector<1x32x1xf32>
    %14 = vector.shape_cast %13 : vector<1x32x1xf32> to vector<32x1xf32>
    %15 = vector.broadcast %14 : vector<32x1xf32> to vector<32x8xf32>
    %16 = arith.addf %12, %15 : vector<32x8xf32>
    %c1 = arith.constant 1 : index
    %17 = memref.load %arg1[%c1] : memref<3xf32, #tpu.memory_space<smem>>
    %18 = vector.broadcast %17 : f32 to vector<32x8xf32>
    %19 = arith.mulf %18, %16 : vector<32x8xf32>
    %20 = math.tanh %19 : vector<32x8xf32>
    %c1_13 = arith.constant 1 : index
    %c0_14 = arith.constant 0 : index
    %c0_15 = arith.constant 0 : index
    %21 = vector.load %arg5[%c1_13, %c0_14, %c0_15] : memref<2x32x32xf32, #tpu.memory_space<vmem>>, vector<1x32x32xf32>
    %22 = vector.shape_cast %21 : vector<1x32x32xf32> to vector<32x32xf32>
    %cst_16 = arith.constant dense<0.000000e+00> : vector<32x8xf32>
    %23 = tpu.matmul %22, %20, %cst_16 {dimension_numbers = #tpu.dot_dimension_numbers<[1], [0], [0], [1], [0, 0, 1, 1], [], []>} : vector<32x32xf32>, vector<32x8xf32>, vector<32x8xf32> -> vector<32x8xf32>
    %c1_17 = arith.constant 1 : index
    %c0_18 = arith.constant 0 : index
    %c0_19 = arith.constant 0 : index
    %24 = vector.load %arg6[%c1_17, %c0_18, %c0_19] : memref<2x32x1xf32, #tpu.memory_space<vmem>>, vector<1x32x1xf32>
    %25 = vector.shape_cast %24 : vector<1x32x1xf32> to vector<32x1xf32>
    %26 = vector.broadcast %25 : vector<32x1xf32> to vector<32x8xf32>
    %27 = arith.addf %23, %26 : vector<32x8xf32>
    %c2 = arith.constant 2 : index
    %28 = memref.load %arg1[%c2] : memref<3xf32, #tpu.memory_space<smem>>
    %29 = vector.broadcast %28 : f32 to vector<32x8xf32>
    %30 = arith.mulf %29, %27 : vector<32x8xf32>
    %31 = math.tanh %30 : vector<32x8xf32>
    %c0_20 = arith.constant 0 : index
    %c0_21 = arith.constant 0 : index
    %32 = vector.load %arg7[%c0_20, %c0_21] : memref<4x32xf32, #tpu.memory_space<vmem>>, vector<4x32xf32>
    %cst_22 = arith.constant dense<0.000000e+00> : vector<8x4xf32>
    %33 = tpu.matmul %31, %32, %cst_22 {dimension_numbers = #tpu.dot_dimension_numbers<[0], [1], [1], [0], [0, 1, 1, 0], [], []>} : vector<32x8xf32>, vector<4x32xf32>, vector<8x4xf32> -> vector<8x4xf32>
    %c0_23 = arith.constant 0 : index
    %c0_24 = arith.constant 0 : index
    %34 = vector.load %arg8[%c0_23, %c0_24] : memref<1x4xf32, #tpu.memory_space<vmem>>, vector<1x4xf32>
    %35 = vector.broadcast %34 : vector<1x4xf32> to vector<8x4xf32>
    %36 = arith.addf %33, %35 : vector<8x4xf32>
    %c0_25 = arith.constant 0 : index
    %c0_26 = arith.constant 0 : index
    %37 = vector.load %arg9[%c0_25, %c0_26] : memref<8x4xf32, #tpu.memory_space<vmem>>, vector<8x4xf32>
    tpu.vector_store %arg9[%c0_25, %c0_26], %36 {strides = array<i32>} : memref<8x4xf32, #tpu.memory_space<vmem>>, vector<8x4xf32>,
    return
  }
  func.func @transform_0(%arg0: i32, %arg1: memref<3xf32, #tpu.memory_space<smem>>) -> (i32, i32) {
    %c0_i32 = arith.constant 0 : i32
    %c0_i32_0 = arith.constant 0 : i32
    return %arg0, %c0_i32 : i32, i32
  }
  func.func @transform_1(%arg0: i32, %arg1: memref<3xf32, #tpu.memory_space<smem>>) -> (i32, i32) {
    %c0_i32 = arith.constant 0 : i32
    %c0_i32_0 = arith.constant 0 : i32
    %c0_i32_1 = arith.constant 0 : i32
    return %c0_i32, %c0_i32_0 : i32, i32
  }
  func.func @transform_2(%arg0: i32, %arg1: memref<3xf32, #tpu.memory_space<smem>>) -> (i32, i32) {
    %c0_i32 = arith.constant 0 : i32
    %c0_i32_0 = arith.constant 0 : i32
    %c0_i32_1 = arith.constant 0 : i32
    return %c0_i32, %c0_i32_0 : i32, i32
  }
  func.func @transform_3(%arg0: i32, %arg1: memref<3xf32, #tpu.memory_space<smem>>) -> (i32, i32, i32) {
    %c0_i32 = arith.constant 0 : i32
    %c0_i32_0 = arith.constant 0 : i32
    %c0_i32_1 = arith.constant 0 : i32
    %c0_i32_2 = arith.constant 0 : i32
    return %c0_i32, %c0_i32_0, %c0_i32_1 : i32, i32, i32
  }
  func.func @transform_4(%arg0: i32, %arg1: memref<3xf32, #tpu.memory_space<smem>>) -> (i32, i32, i32) {
    %c0_i32 = arith.constant 0 : i32
    %c0_i32_0 = arith.constant 0 : i32
    %c0_i32_1 = arith.constant 0 : i32
    %c0_i32_2 = arith.constant 0 : i32
    return %c0_i32, %c0_i32_0, %c0_i32_1 : i32, i32, i32
  }
  func.func @transform_5(%arg0: i32, %arg1: memref<3xf32, #tpu.memory_space<smem>>) -> (i32, i32) {
    %c0_i32 = arith.constant 0 : i32
    %c0_i32_0 = arith.constant 0 : i32
    %c0_i32_1 = arith.constant 0 : i32
    return %c0_i32, %c0_i32_0 : i32, i32
  }
  func.func @transform_6(%arg0: i32, %arg1: memref<3xf32, #tpu.memory_space<smem>>) -> (i32, i32) {
    %c0_i32 = arith.constant 0 : i32
    %c0_i32_0 = arith.constant 0 : i32
    %c0_i32_1 = arith.constant 0 : i32
    return %c0_i32, %c0_i32_0 : i32, i32
  }
  func.func @transform_7(%arg0: i32, %arg1: memref<3xf32, #tpu.memory_space<smem>>) -> (i32, i32) {
    %c0_i32 = arith.constant 0 : i32
    %c0_i32_0 = arith.constant 0 : i32
    return %arg0, %c0_i32 : i32, i32
  }
}

</mosaic_0001>

<bundles_post_ra>
// kernel: tpu_custom_call.1
= control target key start
LH: loop header
LB: loop body
LE: loop exit
PB: predicated region body
PF: predicated region fallthrough
CT: control target
= control target key end

     0   :  { %s418_s30 = smov [#allocation3]   ;;  %s568_s0 = inlined_call_operand.vmem [shape: f32[3], index: 0, kind: input, shape index: {}]   ;;  %s569_s1 = inlined_call_operand.vmem [shape: f32[8,4], index: 1, kind: input, shape index: {}]   ;;  %s570_s2 = inlined_call_operand.vmem [shape: f32[32,4], index: 2, kind: input, shape index: {}]   ;;  %s571_s3 = inlined_call_operand.vmem [shape: f32[32,1], index: 3, kind: input, shape index: {}]   ;;  %s572_s4 = inlined_call_operand.vmem [shape: f32[2,32,32], index: 4, kind: input, shape index: {}]   ;;  %s573_s5 = inlined_call_operand.vmem [shape: f32[2,32,1], index: 5, kind: input, shape index: {}]   ;;  %s574_s6 = inlined_call_operand.vmem [shape: f32[4,32], index: 6, kind: input, shape index: {}]   ;;  %s575_s7 = inlined_call_operand.vmem [shape: f32[1,4], index: 7, kind: input, shape index: {}]   ;;  %s576_s8 = inlined_call_operand.vmem [shape: f32[8,4], index: 8, kind: output, shape index: {}]  }
   0x1   :  { %s14_s29 = sshll.u32 %s568_s0, 4  ;;  %s15_s29 = int_to_ptr.vmem [resolvable:$true] %s14_s29 }
   0x2   :  { %17 = dma.vmem_to_smem %s15_s29, 16, %s418_s30, [#allocation2] }
   0x3   :  { %416 = dma.done.wait [#allocation2], 16 }
   0x4   :  { %417 = vsyncadd [#allocation2], 4294967280 }
   0x5   :  { %20 = sfence }
   0x6   :  { %v35_v0 = vld [vmem:[%s569_s1] sm:$0xff]  ;;  %vm64_vm0 = vcmask 31744   ;;  %v41_v1 = vld [vmem:[%s571_s3 + $0x8] sm:$0xff]  ;;  %v419_v3 = vmov 0   ;;  %v43_v4 = vld [vmem:[%s571_s3 + $0x18] sm:$0xff]  ;;  %s109_s10 = sld [smem:[#allocation3]] }
   0x7   :  { %348 = vmatpush.xpose.msk.msra.mxu0 %vm64_vm0, %v35_v0  ;;  %v36_v2 = vld [vmem:[%s570_s2] sm:$0xff]  ;;  %377 = vset.pattern.permute.xlu1 %v419_v3  ;;  %v42_v6 = vld [vmem:[%s571_s3 + $0x10] sm:$0xff]  ;;  %v37_v7 = vld [vmem:[%s570_s2 + $0x8] sm:$0xff]  ;;  %vm147_vm1 = vcmask 261120   ;;  %s357_s24 = sld [smem:[#allocation3 + $0x1]] }
   0x8   :  { %51 = vperm.xlu1 %377, %v41_v1   ;;  %376 = vset.pattern.permute.xlu0 %v419_v3  ;;  %v40_v5 = vld [vmem:[%s571_s3] sm:$0xff]  ;;  %v124_v9 = vld [vmem:[%s573_s5 + $0x8] sm:$0xff]  ;;  %v38_v10 = vld [vmem:[%s570_s2 + $0x10] sm:$0xff]  ;;  %s370_s9 = sld [smem:[#allocation3 + $0x2]] }
   0x9   :  { %61 = vperm.xlu0 %376, %v43_v4   ;;  %378 = vset.pattern.permute.xlu2 %v419_v3  ;;  %v123_v8 = vld [vmem:[%s573_s5] sm:$0xff]  ;;  %v364_v11 = vld [vmem:[%s573_s5 + $0x30] sm:$0xff]  ;;  %v363_v12 = vld [vmem:[%s573_s5 + $0x28] sm:$0xff] }
   0xa   :  { %349 = vmatmul.msk.f32.vlgmr.msra.gmra.mxu0 %vm64_vm0, %v36_v2  ;;  %v39_v13 = vld [vmem:[%s570_s2 + $0x18] sm:$0xff]  ;;  %v119_v35 = vld [vmem:[%s572_s4] sm:$0xff]  ;;  %v125_v37 = vld [vmem:[%s573_s5 + $0x10] sm:$0xff] }
   0xb   :  { %v126_v32 = vld [vmem:[%s573_s5 + $0x18] sm:$0xff]  ;;  %v120_v38 = vld [vmem:[%s572_s4 + $0x8] sm:$0xff]  ;;  %v362_v39 = vld [vmem:[%s573_s5 + $0x20] sm:$0xff] }
   0xc   :  { %v110_v25 = vstv %s109_s10  ;;  %144 = vperm.xlu2 %378, %v126_v32   ;;  %v121_v40 = vld [vmem:[%s572_s4 + $0x10] sm:$0xff]  ;;  %v365_v41 = vld [vmem:[%s573_s5 + $0x38] sm:$0xff]  ;;  %v358_v63 = vld [vmem:[%s572_s4 + $0x20] sm:$0xff] }
   0xd   :  { %v122_v42 = vld [vmem:[%s572_s4 + $0x18] sm:$0xff]  ;;  %v190_v54 = vstv %s357_s24  ;;  %v359_v1 = vld [vmem:[%s572_s4 + $0x28] sm:$0xff]  ;;  %v360_v2 = vld [vmem:[%s572_s4 + $0x30] sm:$0xff] }
   0xe   :  { %v361_v3 = vld [vmem:[%s572_s4 + $0x38] sm:$0xff] }
  0x10   :  { %46 = vperm.xlu1 %377, %v40_v5  }
  0x11   :  { %56 = vperm.xlu0 %376, %v42_v6   ;;  %v271_v6 = vstv %s370_s9 }
  0x12   :  { %350 = vmatmul.msk.f32.gmra.mxu0 %vm64_vm0, %v37_v7 }
  0x14   :  { %139 = vperm.xlu2 %378, %v125_v37  }
  0x18   :  { %129 = vperm.xlu1 %377, %v123_v8  }
  0x19   :  { %134 = vperm.xlu0 %376, %v124_v9   ;;  %v280_v9 = vld [vmem:[%s574_s6] sm:$0xf] }
  0x1a   :  { %351 = vmatmul.msk.f32.gmra.mxu0 %vm64_vm0, %v38_v10  ;;  %371 = vmatpush.xpose.msk.msra.mxu3 %vm147_vm1, %v280_v9 }
  0x1c   :  { %211 = vperm.xlu2 %378, %v362_v39  }
  0x20   :  { %221 = vperm.xlu1 %377, %v364_v11  }
  0x21   :  { %216 = vperm.xlu0 %376, %v363_v12  }
  0x22   :  { %352 = vmatmul.msk.f32.gmra.mxu0 %vm64_vm0, %v39_v13 }
  0x24   :  { %226 = vperm.xlu2 %378, %v365_v41  }
  0x66   :  { %v145_v45 = vpop.permute.xlu2 %144 }
  0x6e   :  { %v140_v47 = vpop.permute.xlu2 %139 }
  0x76   :  { %v212_v4 = vpop.permute.xlu2 %211 }
  0x7a   :  { %v52_v17 = vpop.permute.xlu1 %51 }
  0x7b   :  { %v62_v16 = vpop.permute.xlu0 %61 }
  0x82   :  { %v47_v21 = vpop.permute.xlu1 %46 }
  0x83   :  { %v57_v19 = vpop.permute.xlu0 %56 }
  0x87   :  { %v97_v14 = vpop.f32.mrf.mxu0 }
  0x88   :  { %v98_v26 = vadd.f32 %v97_v14, %v47_v21 }
  0x8a   :  { %v111_v30 = vmul.f32 %v110_v25, %v98_v26  ;;  %v130_v53 = vpop.permute.xlu1 %129 }
  0x8b   :  { %v135_v49 = vpop.permute.xlu0 %134 }
  0x8f   :  { %v100_v15 = vpop.f32.mrf.mxu0 }
  0x90   :  { %v101_v23 = vadd.f32 %v100_v15, %v52_v17 }
  0x92   :  { %v112_v29 = vmul.f32 %v110_v25, %v101_v23  ;;  %v222_v15 = vpop.permute.xlu1 %221 }
  0x93   :  { %v217_v10 = vpop.permute.xlu0 %216 }
  0x97   :  { %v103_v18 = vpop.f32.mrf.mxu0 }
  0x98   :  { %v104_v20 = vadd.f32 %v103_v18, %v57_v19 }
  0x9a   :  { %v113_v27 = vmul.f32 %v110_v25, %v104_v20  ;;  %v227_v20 = vpop.permute.xlu2 %226 }
  0x9f   :  { %v106_v22 = vpop.f32.mrf.mxu0 }
  0xa0   :  { %v107_v24 = vadd.f32 %v106_v22, %v62_v16 }
  0xa2   :  { %v114_v28 = vmul.f32 %v110_v25, %v107_v24 }
  0xa4   :  { %380 = vtanh.f32 %v114_v28 }
  0xa5   :  { %382 = vtanh.f32 %v113_v27  ;;  %v379_v27 = vld [vmem:[%s575_s7] ss:$0 sm:$0xff] }
  0xa6   :  { %384 = vtanh.f32 %v112_v29 }
  0xa7   :  { %386 = vtanh.f32 %v111_v30 }
  0xaa   :  { %v381_v31 = vpop.eup %380 }
  0xab   :  { %172 = vmatpush.msra.mxu1 %v381_v31  ;;  %v383_v33 = vpop.eup %382 }
  0xac   :  { %v385_v34 = vpop.eup %384 }
  0xad   :  { %173 = vmatpush.msra.mxu1 %v383_v33  ;;  %v387_v36 = vpop.eup %386 }
  0xaf   :  { %174 = vmatpush.msra.mxu1 %v385_v34 }
  0xb1   :  { %175 = vmatpush.msra.mxu1 %v387_v36 }
  0xb2   :  { %353 = vmatmul.msk.f32.vlgmr.msra.gmra.mxu1 %vm147_vm1, %v119_v35 }
  0xba   :  { %354 = vmatmul.msk.f32.gmra.mxu1 %vm147_vm1, %v120_v38 }
  0xc2   :  { %355 = vmatmul.msk.f32.gmra.mxu1 %vm147_vm1, %v121_v40 }
  0xca   :  { %356 = vmatmul.msk.f32.gmra.mxu1 %vm147_vm1, %v122_v42 }
 0x12f   :  { %v177_v43 = vpop.f32.mrf.mxu1 }
 0x130   :  { %v178_v55 = vadd.f32 %v177_v43, %v130_v53 }
 0x132   :  { %v191_v59 = vmul.f32 %v190_v54, %v178_v55 }
 0x137   :  { %v180_v44 = vpop.f32.mrf.mxu1 }
 0x138   :  { %v181_v51 = vadd.f32 %v180_v44, %v135_v49 }
 0x13a   :  { %v192_v58 = vmul.f32 %v190_v54, %v181_v51 }
 0x13f   :  { %v183_v46 = vpop.f32.mrf.mxu1 }
 0x140   :  { %v184_v48 = vadd.f32 %v183_v46, %v140_v47 }
 0x142   :  { %v193_v56 = vmul.f32 %v190_v54, %v184_v48 }
 0x147   :  { %v186_v50 = vpop.f32.mrf.mxu1 }
 0x148   :  { %v187_v52 = vadd.f32 %v186_v50, %v145_v45 }
 0x14a   :  { %v194_v57 = vmul.f32 %v190_v54, %v187_v52 }
 0x14c   :  { %388 = vtanh.f32 %v194_v57 }
 0x14d   :  { %390 = vtanh.f32 %v193_v56 }
 0x14e   :  { %392 = vtanh.f32 %v192_v58 }
 0x14f   :  { %394 = vtanh.f32 %v191_v59 }
 0x152   :  { %v389_v60 = vpop.eup %388 }
 0x153   :  { %253 = vmatpush.msra.mxu2 %v389_v60  ;;  %v391_v61 = vpop.eup %390 }
 0x154   :  { %v393_v62 = vpop.eup %392 }
 0x155   :  { %254 = vmatpush.msra.mxu2 %v391_v61  ;;  %v395_v0 = vpop.eup %394 }
 0x157   :  { %255 = vmatpush.msra.mxu2 %v393_v62 }
 0x159   :  { %256 = vmatpush.msra.mxu2 %v395_v0 }
 0x15a   :  { %366 = vmatmul.msk.f32.vlgmr.msra.gmra.mxu2 %vm147_vm1, %v358_v63 }
 0x162   :  { %367 = vmatmul.msk.f32.gmra.mxu2 %vm147_vm1, %v359_v1 }
 0x16a   :  { %368 = vmatmul.msk.f32.gmra.mxu2 %vm147_vm1, %v360_v2 }
 0x172   :  { %369 = vmatmul.msk.f32.gmra.mxu2 %vm147_vm1, %v361_v3 }
 0x1dd   :  { %v258_v5 = vpop.f32.mrf.mxu2 }
 0x1de   :  { %v259_v7 = vadd.f32 %v258_v5, %v212_v4 }
 0x1e0   :  { %v272_v8 = vmul.f32 %v271_v6, %v259_v7 }
 0x1e2   :  { %396 = vtanh.f32 %v272_v8 }
 0x1e5   :  { %v261_v11 = vpop.f32.mrf.mxu2 }
 0x1e6   :  { %v262_v12 = vadd.f32 %v261_v11, %v217_v10 }
 0x1e8   :  { %v397_v13 = vpop.eup %396  ;;  %v273_v14 = vmul.f32 %v271_v6, %v262_v12 }
 0x1e9   :  { %285 = vxpose.xlu0.b32.start [1/4] (short) (narrow) %v397_v13, 8 }
 0x1ea   :  { %398 = vtanh.f32 %v273_v14 }
 0x1ed   :  { %v264_v16 = vpop.f32.mrf.mxu2 }
 0x1ee   :  { %v265_v17 = vadd.f32 %v264_v16, %v222_v15 }
 0x1f0   :  { %v399_v18 = vpop.eup %398  ;;  %v274_v19 = vmul.f32 %v271_v6, %v265_v17 }
 0x1f1   :  { %286 = vxpose.xlu0.b32.cont [2/4] (short) (narrow) %v399_v18, 8 }
 0x1f2   :  { %400 = vtanh.f32 %v274_v19 }
 0x1f5   :  { %v267_v21 = vpop.f32.mrf.mxu2 }
 0x1f6   :  { %v268_v22 = vadd.f32 %v267_v21, %v227_v20 }
 0x1f8   :  { %v401_v23 = vpop.eup %400  ;;  %v275_v24 = vmul.f32 %v271_v6, %v268_v22 }
 0x1f9   :  { %287 = vxpose.xlu0.b32.cont [3/4] (short) (narrow) %v401_v23, 8 }
 0x1fa   :  { %402 = vtanh.f32 %v275_v24 }
 0x200   :  { %v403_v25 = vpop.eup %402 }
 0x201   :  { %288 = vxpose.xlu0.b32.end [4/4] (short) (narrow) %v403_v25, 8 }
 0x28d   :  { %v301_v26 = vpop.trf.xlu0 }
 0x28e   :  { %372 = vmatmul.msk.f32.vlgmr.msra.gmra.mxu3 %vm147_vm1, %v301_v26 }
 0x311   :  { %v340_v28 = vpop.f32.mrf.mxu3 }
 0x312   :  { %v341_v29 = vadd.f32 %v379_v27, %v340_v28 }
 0x314   :  { %343 = vst.msk [vmem:[%s576_s8] sm:$0xff] %vm64_vm0, %v341_v29 }

</bundles_post_ra>
